<compile_context>
chip_gen: v7x
topology: tpu7x:2x2x1
jax: 0.10.0
libtpu: 0.0.40
codegen_flags: <defaults>
</compile_context>

<pallas_src>
import jax
import jax.numpy as jnp
from jax.experimental import pallas as pl
from jax.experimental.pallas import tpu as pltpu


def _vmem():
    return pl.BlockSpec(memory_space=pltpu.MemorySpace.VMEM)


# ---------------------------------------------------------------------------
# Single fused kernel: GConvGRU (ChebConv K=2 gates) + relu + gather +
# hadamard + (Linear(H,2)+sum) head.
# ---------------------------------------------------------------------------
def _fused_gconvgru_kernel(xh_ref, h0_ref, lhat_ref, eli_ref,
                           w0_ref, w1_ref, whh_ref, bias_ref, head_ref,
                           pred_ref, hid_ref):
    f32 = jnp.float32
    xh = xh_ref[...]          # (N, C+Hd)  [x | h_prev]  (wrapper-side concat)
    h = h0_ref[...]           # (N, Hd)    previous hidden state
    lhat = lhat_ref[...]      # (N, N)     dense Chebyshev operator L_hat
    w0 = w0_ref[...]          # (C+Hd, 3Hd) packed T0 weights [x z|r|h~ ; h z|r|0]
    w1 = w1_ref[...]          # (C+Hd, 3Hd) packed T1 weights
    whh = whh_ref[...]        # (2Hd, Hd)   packed conv_h_h [w0 ; w1] (acts on h*r)
    b = bias_ref[...]         # (1, 3Hd)    per-gate pre-summed biases

    n = xh.shape[0]
    hd = h.shape[1]

    # One L_hat propagation over concat([x, h]) instead of two separate dots.
    lxh = jnp.dot(lhat, xh, preferred_element_type=f32)               # (N, C+Hd)

    # All x/h gate convs fused into 2 MXU dots; bias added once to the slab.
    g = (jnp.dot(xh, w0, preferred_element_type=f32)
         + jnp.dot(lxh, w1, preferred_element_type=f32) + b)          # (N, 3Hd)

    # Joint sigmoid over the packed z|r block; slice afterwards.
    zr = jax.nn.sigmoid(g[:, :2 * hd])
    z = zr[:, :hd]
    r = zr[:, hd:]

    # Candidate-state conv on h*r (must come after r, so it stays separate).
    hr = h * r
    lhr = jnp.dot(lhat, hr, preferred_element_type=f32)               # (N, Hd)
    ghh = (jnp.dot(hr, whh[:hd, :], preferred_element_type=f32)
           + jnp.dot(lhr, whh[hd:, :], preferred_element_type=f32))   # (N, Hd)
    h_tilde = jnp.tanh(g[:, 2 * hd:] + ghh)

    h_new = z * h + (1.0 - z) * h_tilde                               # (N, Hd)
    hid_ref[...] = h_new                                              # returned hidden

    # Link head: relu -> combined src|dst one-hot gather (ONE MXU dot) ->
    # hadamard -> collapsed Linear(Hd,2)+sum(-1) matvec -> lane-dense (1, Ep).
    h_relu = jnp.maximum(h_new, 0.0)
    two_ep = eli_ref.shape[0]                 # 2*Ep, Ep a multiple of 128
    ep = two_ep // 2
    iota = jax.lax.broadcasted_iota(jnp.int32, (two_ep, n), 1)
    one_hot = (iota == eli_ref[...]).astype(f32)                      # (2Ep, N)
    gathered = jnp.dot(one_hot, h_relu, preferred_element_type=f32)   # (2Ep, Hd)
    hm = gathered[:ep, :] * gathered[ep:, :]                          # (Ep, Hd)

    w_row = head_ref[:, :hd]                                          # (1, Hd) = post_w.sum(0)
    b_head = head_ref[:, hd:hd + 1]                                   # (1, 1)  = post_b.sum()
    # TODO(synk): at production E, replace this M=1 MXU matvec with a VPU
    # multiply + lane reduce, and the O(E*N) one-hot with a scalar-prefetch
    # driven per-row DMA gather.
    pred_ref[...] = jnp.einsum('oc,ec->oe', w_row, hm,
                               preferred_element_type=f32) + b_head   # (1, Ep)


# ---------------------------------------------------------------------------
# JAX glue: dense L_hat (ChebConv sym normalization, lambda_max=2), parameter
# packing, and the single fused pallas_call.
# ---------------------------------------------------------------------------
def cheb_norm_dense(edge_index, num_nodes):
    # ChebConv.__norm__ with normalization='sym', edge_weight=None, lambda_max=2:
    #   L_hat = (2/lambda_max)*(I - D^{-1/2} A D^{-1/2}) - I
    #         = -D^{-1/2} A D^{-1/2}   (zero diagonal; self-loops removed first).
    # Dense form M[dst, src] so propagation is M @ X.
    # The graph is static across GRU steps: call this ONCE and reuse the result.
    # TODO(synk): the data-dependent scatter build stays in plain JAX (no clean
    # Pallas equivalent for the scatter at this size).
    row, col = edge_index[0], edge_index[1]
    not_loop = (row != col).astype(jnp.float32)
    deg = jnp.zeros((num_nodes,), jnp.float32).at[row].add(not_loop)
    dinv = jnp.where(deg > 0, jax.lax.rsqrt(deg), 0.0)
    w = -dinv[row] * dinv[col] * not_loop
    return jnp.zeros((num_nodes, num_nodes), jnp.float32).at[col, row].add(w)


def pack_params(params, hd):
    p = params
    zpad = jnp.zeros((hd, hd), jnp.float32)

    def gate_slab(k):
        # (C+Hd, 3Hd): rows [0:C] = x-side z|r|h~ weights, rows [C:] = h-side
        # z|r weights with the h~ columns zero-padded (conv_h_h acts on h*r).
        return jnp.concatenate([
            jnp.concatenate([p["x_z"][k], p["x_r"][k], p["x_h"][k]], axis=1),
            jnp.concatenate([p["h_z"][k], p["h_r"][k], zpad], axis=1),
        ], axis=0)

    w0 = gate_slab("w0")
    w1 = gate_slab("w1")
    whh = jnp.concatenate([p["h_h"]["w0"], p["h_h"]["w1"]], axis=0)    # (2Hd, Hd)
    bias = jnp.concatenate([
        p["x_z"]["b"] + p["h_z"]["b"],
        p["x_r"]["b"] + p["h_r"]["b"],
        p["x_h"]["b"] + p["h_h"]["b"],
    ]).reshape(1, 3 * hd)                                              # (1, 3Hd)
    head = jnp.concatenate(
        [p["post_w"].sum(axis=0), p["post_b"].sum()[None]]).reshape(1, hd + 1)
    return w0, w1, whh, bias, head


def taobao_gconvgru_forward(x, edge_index, edge_label_index, params,
                            h_prev=None, lhat=None):
    n, c = x.shape
    hd = params["x_z"]["w0"].shape[1]
    e = edge_label_index.shape[1]
    if h_prev is None:
        h_prev = jnp.zeros((n, hd), jnp.float32)
    if lhat is None:
        # Prefer precomputing this once at the call site (static graph).
        lhat = cheb_norm_dense(edge_index, n)

    w0, w1, whh, bias, head = pack_params(params, hd)

    # Merged propagation operand: one L_hat dot instead of two.
    xh = jnp.concatenate([x.astype(jnp.float32), h_prev], axis=1)      # (N, C+Hd)

    # Pad label edges so the prediction row is a full, unmasked 128-lane store.
    ep = max(128, ((e + 127) // 128) * 128)
    src = jnp.pad(edge_label_index[0].astype(jnp.int32), (0, ep - e))
    dst = jnp.pad(edge_label_index[1].astype(jnp.int32), (0, ep - e))
    eli_pad = jnp.concatenate([src, dst]).reshape(2 * ep, 1)           # (2Ep, 1)

    pred_pad, hidden = pl.pallas_call(
        _fused_gconvgru_kernel,
        out_shape=(jax.ShapeDtypeStruct((1, ep), jnp.float32),         # lane-dense pred
                   jax.ShapeDtypeStruct((n, hd), jnp.float32)),        # hidden
        in_specs=[_vmem()] * 9,
        out_specs=(_vmem(), _vmem()),
        input_output_aliases={1: 1},   # h_prev buffer reused for hidden (P8)
        compiler_params=pltpu.CompilerParams(vmem_limit_bytes=32 * 1024 * 1024),
    )(xh, h_prev, lhat, eli_pad, w0, w1, whh, bias, head)
    return pred_pad[0, :e], hidden                                     # (E,), (N, Hd)


# ---------------------------------------------------------------------------
# Deterministic parameters + example inputs.
# ---------------------------------------------------------------------------
def init_params(key, c_in, hd):
    ks = iter(jax.random.split(key, 32))
    s = 0.3

    def cheb(in_c, out_c):
        return dict(
            w0=jax.random.normal(next(ks), (in_c, out_c), jnp.float32) * s,
            w1=jax.random.normal(next(ks), (in_c, out_c), jnp.float32) * s,
            b=jax.random.normal(next(ks), (out_c,), jnp.float32) * s,
        )

    return dict(
        x_z=cheb(c_in, hd), h_z=cheb(hd, hd),
        x_r=cheb(c_in, hd), h_r=cheb(hd, hd),
        x_h=cheb(c_in, hd), h_h=cheb(hd, hd),
        post_w=jax.random.normal(next(ks), (2, hd), jnp.float32) * s,
        post_b=jax.random.normal(next(ks), (2,), jnp.float32) * s,
    )


if __name__ == "__main__":
    C_IN = 4      # in_channels
    HID = 32      # hidden_conv_2
    N = 16        # num nodes
    E_MSG = 32    # message-passing edges
    E_LBL = 16    # supervision (label) edges

    key = jax.random.PRNGKey(0)
    ks = jax.random.split(key, 5)

    x = jax.random.normal(ks[0], (N, C_IN), jnp.float32)
    edge_index = jnp.stack([
        jax.random.randint(ks[1], (E_MSG,), 0, N),
        jax.random.randint(ks[2], (E_MSG,), 0, N)])
    edge_label_index = jnp.stack([
        jax.random.randint(ks[3], (E_LBL,), 0, N),
        jax.random.randint(ks[4], (E_LBL,), 0, N)])

    params = init_params(jax.random.PRNGKey(1), C_IN, HID)

    # Static graph: build L_hat ONCE, reuse across recurrent steps.
    lhat = cheb_norm_dense(edge_index, N)

    pred, hidden = taobao_gconvgru_forward(
        x, edge_index, edge_label_index, params, h_prev=None, lhat=lhat)
    pred = jax.block_until_ready(pred)
    hidden = jax.block_until_ready(hidden)

    assert pred.shape == (E_LBL,)
    assert hidden.shape == (N, HID)
    assert bool(jnp.all(jnp.isfinite(pred))) and bool(jnp.all(jnp.isfinite(hidden)))
    print("KERNEL_OK")
</pallas_src>

<mosaic_0001>
module attributes {stable_mosaic.version = 11 : i64} {
  func.func @_fused_gconvgru_kernel(%arg0: memref<16x36xf32, #tpu.memory_space<vmem>>, %arg1: memref<16x32xf32, #tpu.memory_space<vmem>>, %arg2: memref<16x16xf32, #tpu.memory_space<vmem>>, %arg3: memref<256x1xi32, #tpu.memory_space<vmem>>, %arg4: memref<36x96xf32, #tpu.memory_space<vmem>>, %arg5: memref<36x96xf32, #tpu.memory_space<vmem>>, %arg6: memref<64x32xf32, #tpu.memory_space<vmem>>, %arg7: memref<1x96xf32, #tpu.memory_space<vmem>>, %arg8: memref<1x33xf32, #tpu.memory_space<vmem>>, %arg9: memref<1x128xf32, #tpu.memory_space<vmem>>, %arg10: memref<16x32xf32, #tpu.memory_space<vmem>>) attributes {dimension_semantics = [], scalar_prefetch = 0 : i64, scratch_operands = 0 : i64, tpu.core_type = #tpu.core_type<tc>} {
    %c0 = arith.constant 0 : index
    %c0_0 = arith.constant 0 : index
    %0 = vector.load %arg0[%c0, %c0_0] : memref<16x36xf32, #tpu.memory_space<vmem>>, vector<16x36xf32>
    %c0_1 = arith.constant 0 : index
    %c0_2 = arith.constant 0 : index
    %1 = vector.load %arg1[%c0_1, %c0_2] : memref<16x32xf32, #tpu.memory_space<vmem>>, vector<16x32xf32>
    %c0_3 = arith.constant 0 : index
    %c0_4 = arith.constant 0 : index
    %2 = vector.load %arg2[%c0_3, %c0_4] : memref<16x16xf32, #tpu.memory_space<vmem>>, vector<16x16xf32>
    %c0_5 = arith.constant 0 : index
    %c0_6 = arith.constant 0 : index
    %3 = vector.load %arg4[%c0_5, %c0_6] : memref<36x96xf32, #tpu.memory_space<vmem>>, vector<36x96xf32>
    %c0_7 = arith.constant 0 : index
    %c0_8 = arith.constant 0 : index
    %4 = vector.load %arg5[%c0_7, %c0_8] : memref<36x96xf32, #tpu.memory_space<vmem>>, vector<36x96xf32>
    %c0_9 = arith.constant 0 : index
    %c0_10 = arith.constant 0 : index
    %5 = vector.load %arg6[%c0_9, %c0_10] : memref<64x32xf32, #tpu.memory_space<vmem>>, vector<64x32xf32>
    %c0_11 = arith.constant 0 : index
    %c0_12 = arith.constant 0 : index
    %6 = vector.load %arg7[%c0_11, %c0_12] : memref<1x96xf32, #tpu.memory_space<vmem>>, vector<1x96xf32>
    %cst = arith.constant dense<0.000000e+00> : vector<16x36xf32>
    %7 = tpu.matmul %2, %0, %cst {dimension_numbers = #tpu.dot_dimension_numbers<[1], [0], [0], [1], [0, 0, 1, 1], [], []>} : vector<16x16xf32>, vector<16x36xf32>, vector<16x36xf32> -> vector<16x36xf32>
    %cst_13 = arith.constant dense<0.000000e+00> : vector<16x96xf32>
    %8 = tpu.matmul %0, %3, %cst_13 {dimension_numbers = #tpu.dot_dimension_numbers<[1], [0], [0], [1], [0, 0, 1, 1], [], []>} : vector<16x36xf32>, vector<36x96xf32>, vector<16x96xf32> -> vector<16x96xf32>
    %cst_14 = arith.constant dense<0.000000e+00> : vector<16x96xf32>
    %9 = tpu.matmul %7, %4, %cst_14 {dimension_numbers = #tpu.dot_dimension_numbers<[1], [0], [0], [1], [0, 0, 1, 1], [], []>} : vector<16x36xf32>, vector<36x96xf32>, vector<16x96xf32> -> vector<16x96xf32>
    %10 = arith.addf %8, %9 : vector<16x96xf32>
    %11 = vector.broadcast %6 : vector<1x96xf32> to vector<16x96xf32>
    %12 = arith.addf %10, %11 : vector<16x96xf32>
    %13 = vector.extract_strided_slice %12 {offsets = [0, 0], sizes = [16, 64], strides = [1, 1]} : vector<16x96xf32> to vector<16x64xf32>
    %14 = arith.negf %13 : vector<16x64xf32>
    %15 = math.exp %14 : vector<16x64xf32>
    %cst_15 = arith.constant 1.000000e+00 : f32
    %16 = vector.broadcast %cst_15 : f32 to vector<16x64xf32>
    %17 = arith.addf %16, %15 : vector<16x64xf32>
    %18 = arith.divf %16, %17 : vector<16x64xf32>
    %19 = vector.extract_strided_slice %18 {offsets = [0, 0], sizes = [16, 32], strides = [1, 1]} : vector<16x64xf32> to vector<16x32xf32>
    %20 = vector.extract_strided_slice %18 {offsets = [0, 32], sizes = [16, 32], strides = [1, 1]} : vector<16x64xf32> to vector<16x32xf32>
    %21 = arith.mulf %1, %20 : vector<16x32xf32>
    %cst_16 = arith.constant dense<0.000000e+00> : vector<16x32xf32>
    %22 = tpu.matmul %2, %21, %cst_16 {dimension_numbers = #tpu.dot_dimension_numbers<[1], [0], [0], [1], [0, 0, 1, 1], [], []>} : vector<16x16xf32>, vector<16x32xf32>, vector<16x32xf32> -> vector<16x32xf32>
    %23 = vector.extract_strided_slice %5 {offsets = [0, 0], sizes = [32, 32], strides = [1, 1]} : vector<64x32xf32> to vector<32x32xf32>
    %cst_17 = arith.constant dense<0.000000e+00> : vector<16x32xf32>
    %24 = tpu.matmul %21, %23, %cst_17 {dimension_numbers = #tpu.dot_dimension_numbers<[1], [0], [0], [1], [0, 0, 1, 1], [], []>} : vector<16x32xf32>, vector<32x32xf32>, vector<16x32xf32> -> vector<16x32xf32>
    %25 = vector.extract_strided_slice %5 {offsets = [32, 0], sizes = [32, 32], strides = [1, 1]} : vector<64x32xf32> to vector<32x32xf32>
    %cst_18 = arith.constant dense<0.000000e+00> : vector<16x32xf32>
    %26 = tpu.matmul %22, %25, %cst_18 {dimension_numbers = #tpu.dot_dimension_numbers<[1], [0], [0], [1], [0, 0, 1, 1], [], []>} : vector<16x32xf32>, vector<32x32xf32>, vector<16x32xf32> -> vector<16x32xf32>
    %27 = arith.addf %24, %26 : vector<16x32xf32>
    %28 = vector.extract_strided_slice %12 {offsets = [0, 64], sizes = [16, 32], strides = [1, 1]} : vector<16x96xf32> to vector<16x32xf32>
    %29 = arith.addf %28, %27 : vector<16x32xf32>
    %30 = math.tanh %29 : vector<16x32xf32>
    %31 = arith.mulf %19, %1 : vector<16x32xf32>
    %cst_19 = arith.constant 1.000000e+00 : f32
    %32 = vector.broadcast %cst_19 : f32 to vector<16x32xf32>
    %33 = arith.subf %32, %19 : vector<16x32xf32>
    %34 = arith.mulf %33, %30 : vector<16x32xf32>
    %35 = arith.addf %31, %34 : vector<16x32xf32>
    %c0_20 = arith.constant 0 : index
    %c0_21 = arith.constant 0 : index
    %36 = vector.load %arg10[%c0_20, %c0_21] : memref<16x32xf32, #tpu.memory_space<vmem>>, vector<16x32xf32>
    tpu.vector_store %arg10[%c0_20, %c0_21], %35 {strides = array<i32>} : memref<16x32xf32, #tpu.memory_space<vmem>>, vector<16x32xf32>,
    %cst_22 = arith.constant 0.000000e+00 : f32
    %37 = vector.broadcast %cst_22 : f32 to vector<16x32xf32>
    %38 = arith.maximumf %35, %37 : vector<16x32xf32>
    %39 = tpu.iota {dimensions = array<i32: 1>} : vector<256x16xi32>
    %c0_23 = arith.constant 0 : index
    %c0_24 = arith.constant 0 : index
    %40 = vector.load %arg3[%c0_23, %c0_24] : memref<256x1xi32, #tpu.memory_space<vmem>>, vector<256x1xi32>
    %41 = vector.broadcast %40 : vector<256x1xi32> to vector<256x16xi32>
    %42 = arith.cmpi eq, %39, %41 : vector<256x16xi32>
    %43 = arith.extui %42 : vector<256x16xi1> to vector<256x16xi32>
    %44 = arith.sitofp %43 : vector<256x16xi32> to vector<256x16xf32>
    %cst_25 = arith.constant dense<0.000000e+00> : vector<256x32xf32>
    %45 = tpu.matmul %44, %38, %cst_25 {dimension_numbers = #tpu.dot_dimension_numbers<[1], [0], [0], [1], [0, 0, 1, 1], [], []>} : vector<256x16xf32>, vector<16x32xf32>, vector<256x32xf32> -> vector<256x32xf32>
    %46 = vector.extract_strided_slice %45 {offsets = [0, 0], sizes = [128, 32], strides = [1, 1]} : vector<256x32xf32> to vector<128x32xf32>
    %47 = vector.extract_strided_slice %45 {offsets = [128, 0], sizes = [128, 32], strides = [1, 1]} : vector<256x32xf32> to vector<128x32xf32>
    %48 = arith.mulf %46, %47 : vector<128x32xf32>
    %c0_26 = arith.constant 0 : index
    %c0_27 = arith.constant 0 : index
    %49 = vector.load %arg8[%c0_26, %c0_27] : memref<1x33xf32, #tpu.memory_space<vmem>>, vector<1x32xf32>
    %c0_28 = arith.constant 0 : index
    %c32 = arith.constant 32 : index
    %50 = vector.load %arg8[%c0_28, %c32] : memref<1x33xf32, #tpu.memory_space<vmem>>, vector<1x1xf32>
    "tpu.trace_start"() <{level = 10 : i32, message = "oc,ec->oe"}> : () -> ()
    %cst_29 = arith.constant dense<0.000000e+00> : vector<1x128xf32>
    %51 = tpu.matmul %49, %48, %cst_29 {dimension_numbers = #tpu.dot_dimension_numbers<[1], [1], [0], [0], [0, 0, 1, 0], [], []>} : vector<1x32xf32>, vector<128x32xf32>, vector<1x128xf32> -> vector<1x128xf32>
    "tpu.trace_stop"() : () -> ()
    %52 = vector.broadcast %50 : vector<1x1xf32> to vector<1x128xf32>
    %53 = arith.addf %51, %52 : vector<1x128xf32>
    %c0_30 = arith.constant 0 : index
    %c0_31 = arith.constant 0 : index
    %54 = vector.load %arg9[%c0_30, %c0_31] : memref<1x128xf32, #tpu.memory_space<vmem>>, vector<1x128xf32>
    tpu.vector_store %arg9[%c0_30, %c0_31], %53 {strides = array<i32>} : memref<1x128xf32, #tpu.memory_space<vmem>>, vector<1x128xf32>,
    return
  }
}

</mosaic_0001>

<bundles_post_ra>
// kernel: tpu_custom_call.1
= control target key start
LH: loop header
LB: loop body
LE: loop exit
PB: predicated region body
PF: predicated region fallthrough
CT: control target
= control target key end

     0   :  { %16 = vsyncpa [#allocation3], 0  ;;  %s2317_s0 = inlined_call_operand.vmem [shape: f32[16,36], index: 0, kind: input, shape index: {}]   ;;  %s2318_s1 = inlined_call_operand.hbm [shape: f32[16,32], index: 1, kind: input, shape index: {}, may-alias: {1,10}]   ;;  %s2319_s2 = inlined_call_operand.vmem [shape: f32[16,16], index: 2, kind: input, shape index: {}]   ;;  %s2320_s3 = inlined_call_operand.vmem [shape: s32[256,1], index: 3, kind: input, shape index: {}]   ;;  %s2321_s4 = inlined_call_operand.vmem [shape: f32[36,96], index: 4, kind: input, shape index: {}]   ;;  %s2322_s5 = inlined_call_operand.vmem [shape: f32[36,96], index: 5, kind: input, shape index: {}]   ;;  %s2323_s6 = inlined_call_operand.vmem [shape: f32[64,32], index: 6, kind: input, shape index: {}]   ;;  %s2324_s7 = inlined_call_operand.vmem [shape: f32[1,96], index: 7, kind: input, shape index: {}]   ;;  %s2325_s8 = inlined_call_operand.vmem [shape: f32[1,33], index: 8, kind: input, shape index: {}]   ;;  %s2326_s9 = inlined_call_operand.hbm [shape: f32[1,128], index: 9, kind: output, shape index: {0}]   ;;  %s2327_s10 = inlined_call_operand.hbm [shape: f32[16,32], index: 10, kind: output, shape index: {1}, may-alias: {1,10}]  }
   0x1   :  { %17 = vsyncpa [#allocation4], 0 }
   0x2   :  { %18 = vsyncpa [#allocation7], 0  ;;  %s1864_s13 = smov [#allocation2]   ;;  %s1792_s17 = scalar_lea.hbm %s2318_s1, 256 }
   0x3   :  { %s26_s14 = sshll.u32 %s1864_s13, 4  ;;  %p1793_p0 = scmp.ne.s32.totalorder %s2318_s1, %s1792_s17  ;;  %s27_s14 = int_to_ptr.vmem [resolvable:$true] %s26_s14 }
   0x4   :  { %p1796_p1 = scmp.lt.u32.totalorder %s1792_s17, %s2318_s1 }
   0x6   :  { %p1798_p2 = pnand %p1796_p1, %p1793_p0 }
   0x8   :  { %1801 = shalt.err (!%p1798_p2)
}
   0x9   :  { %s1802_s22 = scalar_lea.vmem %s27_s14, 256  ;;  %p1807_p4 = scmp.lt.s32.totalorder %s27_s14, %s27_s14 }
   0xa   :  { %p1803_p3 = scmp.ne.s32.totalorder %s27_s14, %s1802_s22  ;;  %p1808_p5 = scmp.lt.s32.totalorder %s1802_s22, %s1802_s22 }
   0xc   :  { %p1809_p6 = por %p1808_p5, %p1807_p4 }
   0xe   :  { %p1810_p7 = pnand %p1809_p6, %p1803_p3 }
  0x10   :  { %1813 = shalt.err (!%p1810_p7)
}
  0x11   :  { %s1865_s23 = smov 128   ;;  %s1866_s24 = smov 8  }
  0x12   :  { %32 = dma.hbm_to_vmem [thread:$0]  %s2318_s1, 256, %s27_s14, [#allocation3], %s1865_s23, %s1865_s23, %s1866_s24  }
  0x13   :  { %1858 = dma.done.wait [#allocation3], 256  }
  0x14   :  { %1859 = vsyncadd [#allocation3], 4294967040  ;;  %vm75_vm0 = vcmask 130048   ;;  %v50_v0 = vld [vmem:[%s2317_s0] sm:$0xff]  ;;  %v51_v1 = vld [vmem:[%s2317_s0 + $0x8] sm:$0xff]  ;;  %vm164_vm1 = vcmask 1043456  }
  0x15   :  { %v54_v2 = vld [vmem:[%s2319_s2] sm:$0xff]  ;;  %v1684_v3 = vpack.c.bf16 %v51_v1, %v50_v0  ;;  %v62_v5 = vld [vmem:[%s2322_s5 + $0x8] sm:$0xff]  ;;  %v63_v7 = vld [vmem:[%s2322_s5 + $0x10] sm:$0xff]  ;;  %vm157_vm2 = vcmask 293888   ;;  %vm432_vm3 = vcmask 261120   ;;  %s1868_s29 = smov 64  }
  0x16   :  { %1539 = vmatprep.mubr.msk.f32.mxu0 %vm75_vm0, %v54_v2  ;;  %v61_v4 = vld [vmem:[%s2322_s5] sm:$0xff]  ;;  %v64_v8 = vld [vmem:[%s2322_s5 + $0x18] sm:$0xff]  ;;  %v1971_v10 = vld [vmem:[%s2319_s2 + $0x8] sm:$0xff]  ;;  %v1869_v57 = vmov 0  }
  0x17   :  { %v1688_v6 = vpack.c.bf16 %v62_v5, %v61_v4  ;;  %1685 = vmatprep.subr.bf16.mxu0 %v1684_v3  ;;  %v1692_v9 = vpack.c.bf16 %v64_v8, %v63_v7  ;;  %v65_v11 = vld [vmem:[%s2322_s5 + $0x20] sm:$0xf]  ;;  %v57_v13 = vld [vmem:[%s2321_s4 + $0x8] sm:$0xff]  ;;  %v58_v15 = vld [vmem:[%s2321_s4 + $0x10] sm:$0xff]  ;;  %1776 = vset.pattern.permute.xlu0 %v1869_v57 }
  0x18   :  { %1687 = vmatpush3.bf16.msra.mxu0 %v1684_v3  ;;  %v56_v12 = vld [vmem:[%s2321_s4] sm:$0xff]  ;;  %v59_v16 = vld [vmem:[%s2321_s4 + $0x18] sm:$0xff]  ;;  %v2010_v35 = vld [vmem:[#allocation2 + $0x8] sm:$0xff]  ;;  %1777 = vset.pattern.permute.xlu1 %v1869_v57 }
  0x19   :  { %1689 = vmatprep.subr.bf16.mxu1 %v1688_v6  ;;  %v1696_v14 = vpack.c.bf16 %v57_v13, %v56_v12  ;;  %v1700_v19 = vpack.c.bf16 %v59_v16, %v58_v15  ;;  %v60_v20 = vld [vmem:[%s2321_s4 + $0x20] sm:$0xf]  ;;  %s1867_s4 = smov 96   ;;  %v71_v39 = vld [vmem:[%s2323_s6 + $0x28] sm:$0xff]  ;;  %v72_v44 = vld [vmem:[%s2323_s6 + $0x30] sm:$0xff] }
  0x1a   :  { %1691 = vmatpush3.bf16.msra.mxu1 %v1688_v6  ;;  %v1360_v21 = vld [vmem:[%s2324_s7] ss:$0 sm:$0xff]  ;;  %v73_v45 = vld [vmem:[%s2323_s6 + $0x38] sm:$0xff]  ;;  %v67_v48 = vld [vmem:[%s2323_s6 + $0x8] sm:$0xff] }
  0x1b   :  { %1693 = vmatprep.subr.bf16.mxu1 %v1692_v9  ;;  %1540 = vmatmul.mubr.msk.f32.vlgmr.msra.gmra.mrb[0].mxu0 %vm75_vm0, %v1971_v10  ;;  %v2012_v36 = vld [vmem:[#allocation2] sm:$0xff]  ;;  %v1712_v46 = vpack.c.bf16 %v73_v45, %v72_v44  ;;  %v68_v50 = vld [vmem:[%s2323_s6 + $0x10] sm:$0xff]  ;;  %v69_v51 = vld [vmem:[%s2323_s6 + $0x18] sm:$0xff] }
  0x1c   :  { %1572 = vmatprep.mubr.msk.f32.mxu0 %vm75_vm0, %v54_v2  ;;  %v70_v38 = vld [vmem:[%s2323_s6 + $0x20] sm:$0xff]  ;;  %v1720_v54 = vpack.c.bf16 %v69_v51, %v68_v50  ;;  %v630_v2 = vld [vmem:[%s2320_s3 + $0x8] sm:$0xff]  ;;  %v631_v4 = vld [vmem:[%s2320_s3 + $0x10] sm:$0xff]  ;;  %v1870_v50 = vmov 0.0  }
  0x1d   :  { %v1708_v43 = vpack.c.bf16 %v71_v39, %v70_v38  ;;  %v66_v47 = vld [vmem:[%s2323_s6] sm:$0xff]  ;;  %v634_v3 = vld [vmem:[%s2320_s3 + $0x28] sm:$0xff]  ;;  %v636_v5 = vld [vmem:[%s2320_s3 + $0x38] sm:$0xff] }
  0x1e   :  { %1695 = vmatpush3.bf16.msra.mxu1 %v1692_v9  ;;  %v1716_v49 = vpack.c.bf16 %v67_v48, %v66_v47  ;;  %v629_v63 = vld [vmem:[%s2320_s3] sm:$0xff]  ;;  %v638_v7 = vld [vmem:[%s2320_s3 + $0x48] sm:$0xff]  ;;  %v635_v8 = vld [vmem:[%s2320_s3 + $0x30] sm:$0xff]  ;;  %v627_v48 = vlaneseq }
  0x1f   :  { %1550 = vmatprep.subr.msk.mxu1 %vm164_vm1, %v65_v11  ;;  %v633_v6 = vld [vmem:[%s2320_s3 + $0x20] sm:$0xff]  ;;  %v640_v9 = vld [vmem:[%s2320_s3 + $0x58] sm:$0xff]  ;;  %v639_v12 = vld [vmem:[%s2320_s3 + $0x50] sm:$0xff] }
  0x20   :  { %v644_v13 = vld [vmem:[%s2320_s3 + $0x78] sm:$0xff]  ;;  %v646_v15 = vld [vmem:[%s2320_s3 + $0x88] sm:$0xff]  ;;  %v643_v16 = vld [vmem:[%s2320_s3 + $0x70] sm:$0xff] }
  0x22   :  { %1551 = vmatpush3.msk.msra.mxu1 %vm164_vm1, %v65_v11  ;;  %v642_v11 = vld [vmem:[%s2320_s3 + $0x68] sm:$0xff] }
  0x23   :  { %1697 = vmatprep.subr.bf16.mxu1 %v1696_v14 }
  0xee   :  { %v1541_v17 = vpop.f32.mrb[0].mxu0 }
  0xef   :  { %v148_v18 = vpop.f32.mrb[1].mxu0 }
  0xf0   :  { %1552 = vmatprep.mubr.msk.f32.mxu1 %vm157_vm2, %v148_v18  ;;  %v645_v18 = vld [vmem:[%s2320_s3 + $0x80] sm:$0xff] }
  0xf1   :  { %1553 = vmatmul.mubr.msk.f32.vlgmr.msra.gmra.mrb[0].mxu1 %vm157_vm2, %v1541_v17  ;;  %v648_v17 = vld [vmem:[%s2320_s3 + $0x98] sm:$0xff] }
  0xf2   :  { %1699 = vmatpush3.bf16.msra.mxu1 %v1696_v14  ;;  %1565 = vmatprep.mubr.msk.f32.mxu1 %vm157_vm2, %v50_v0  ;;  %v641_v14 = vld [vmem:[%s2320_s3 + $0x60] sm:$0xff] }
  0xf3   :  { %1701 = vmatprep.subr.bf16.mxu1 %v1700_v19 }
  0xf6   :  { %1703 = vmatpush3.bf16.msra.mxu1 %v1700_v19  ;;  %v650_v19 = vld [vmem:[%s2320_s3 + $0xa8] sm:$0xff] }
  0xf7   :  { %1563 = vmatprep.subr.msk.mxu1 %vm164_vm1, %v60_v20 }
  0xfa   :  { %1564 = vmatpush3.msk.msra.mxu1 %vm164_vm1, %v60_v20  ;;  %v647_v20 = vld [vmem:[%s2320_s3 + $0x90] sm:$0xff] }
  0xfb   :  { %1566 = vmatmul.mubr.msk.f32.vlgmr.msra.gmra.mrb[0].mxu1 %vm157_vm2, %v51_v1  ;;  %v632_v1 = vld [vmem:[%s2320_s3 + $0x18] sm:$0xff] }
 0x1ce   :  { %v1567_v22 = vpop.f32.mrb[0].mxu1 }
 0x1cf   :  { %v2001_v23 = vadd.f32 %v1567_v22, %v1360_v21  ;;  %v318_v24 = vpop.f32.mrb[1].mxu1  ;;  %v649_v22 = vld [vmem:[%s2320_s3 + $0xa0] sm:$0xff] }
 0x1d0   :  { %v333_v25 = vadd.f32 %v1360_v21, %v318_v24  ;;  %v652_v21 = vld [vmem:[%s2320_s3 + $0xb8] sm:$0xff]  ;;  %v651_v24 = vld [vmem:[%s2320_s3 + $0xb0] sm:$0xff] }
 0x1d1   :  { %v1362_v26 = vmul.f32 -1.442695, %v2001_v23 }
 0x1d2   :  { %v1361_v27 = vmul.f32 -1.442695, %v333_v25 }
 0x1d3   :  { %1780 = vpow2.f32 %v1362_v26  ;;  %v653_v26 = vld [vmem:[%s2320_s3 + $0xc0] sm:$0xff] }
 0x1d4   :  { %1782 = vpow2.f32 %v1361_v27  ;;  %v658_v27 = vld [vmem:[%s2320_s3 + $0xe8] sm:$0xff] }
 0x1dd   :  { %v1781_v28 = vpop.eup %1780 }
 0x1de   :  { %v1783_v29 = vpop.eup %1782  ;;  %v342_v31 = vadd.f32 1.0, %v1781_v28  ;;  %v655_v28 = vld [vmem:[%s2320_s3 + $0xd0] sm:$0xff] }
 0x1df   :  { %v341_v30 = vadd.f32 1.0, %v1783_v29  ;;  %v660_v29 = vld [vmem:[%s2320_s3 + $0xf8] sm:$0xff] }
 0x1e1   :  { %1784 = vrcp.f32 %v341_v30  ;;  %v657_v30 = vld [vmem:[%s2320_s3 + $0xe0] sm:$0xff] }
 0x1e2   :  { %1786 = vrcp.f32 %v342_v31  ;;  %v659_v31 = vld [vmem:[%s2320_s3 + $0xf0] sm:$0xff] }
 0x1eb   :  { %v2004_v32 = vpop.eup %1784 }
 0x1ec   :  { %349 = vrot.lane.b32.xlu0 %v2004_v32, %s1867_s4  ;;  %v2007_v33 = vpop.eup %1786  ;;  %v607_v38 = vmul.f32 %v2004_v32, %v2012_v36 }
 0x1f0   :  { %351 = vrot.lane.b32.xlu0 %v2007_v33, %s1867_s4 }
 0x25e   :  { %v350_v34 = vpop.permute.xlu0 %349 }
 0x25f   :  { %v355_v40 = vmul.f32 %v350_v34, %v2012_v36  ;;  %v609_v34 = vsub.f32 1.0, %v2004_v32  ;;  %v2152_v32 = vand.u32 127, %v627_v48 }
 0x262   :  { %v352_v37 = vpop.permute.xlu0 %351 }
 0x263   :  { %v356_v41 = vmul.f32 %v352_v37, %v2010_v35 }
 0x265   :  { %v1704_v42 = vpack.c.bf16 %v356_v41, %v355_v40 }
 0x267   :  { %1705 = vmatprep.subr.bf16.mxu0 %v1704_v42 }
 0x268   :  { %1707 = vmatpush3.bf16.msra.mxu0 %v1704_v42 }
 0x269   :  { %1709 = vmatprep.subr.bf16.mxu0 %v1708_v43 }
 0x26b   :  { %1573 = vmatmul.mubr.msk.f32.vlgmr.msra.gmra.mrb[2].mxu0 %vm75_vm0, %v1971_v10  ;;  %v637_v10 = vld [vmem:[%s2320_s3 + $0x40] sm:$0xff] }
 0x26c   :  { %1711 = vmatpush3.bf16.msra.mxu0 %v1708_v43  ;;  %v608_v43 = vmul.f32 %v2007_v33, %v2010_v35 }
 0x26d   :  { %1713 = vmatprep.subr.bf16.mxu0 %v1712_v46 }
 0x270   :  { %1715 = vmatpush3.bf16.msra.mxu0 %v1712_v46 }
 0x271   :  { %1717 = vmatprep.subr.bf16.mxu0 %v1716_v49 }
 0x33e   :  { %v1574_v52 = vpop.f32.mrb[2].mxu0 }
 0x33f   :  { %v423_v53 = vpop.f32.mrb[3].mxu0 }
 0x340   :  { %1583 = vmatprep.mubr.msk.f32.mxu0 %vm432_vm3, %v423_v53 }
 0x341   :  { %1584 = vmatmul.mubr.msk.f32.vlgmr.msra.gmra.mrb[4].mxu0 %vm432_vm3, %v1574_v52 }
 0x342   :  { %1719 = vmatpush3.bf16.msra.mxu0 %v1716_v49  ;;  %1594 = vmatprep.mubr.msk.f32.mxu0 %vm432_vm3, %v355_v40 }
 0x343   :  { %1721 = vmatprep.subr.bf16.mxu0 %v1720_v54 }
 0x346   :  { %1723 = vmatpush3.bf16.msra.mxu0 %v1720_v54 }
 0x349   :  { %1595 = vmatmul.mubr.msk.f32.vlgmr.msra.gmra.mrb[4].mxu0 %vm432_vm3, %v356_v41  ;;  %v610_v41 = vsub.f32 1.0, %v2007_v33 }
 0x41c   :  { %v1596_v55 = vpop.f32.mrb[4].mxu0 }
 0x41d   :  { %v586_v56 = vpop.f32.mrb[5].mxu0 }
 0x41e   :  { %597 = vrot.lane.b32.xlu1 %v586_v56, %s1868_s29 }
 0x422   :  { %599 = vrot.lane.b32.xlu1 %v1596_v55, %s1868_s29 }
 0x490   :  { %v598_v58 = vpop.permute.xlu1 %597 }
 0x491   :  { %v603_v59 = vadd.f32 %v598_v58, %v333_v25  ;;  %v656_v25 = vld [vmem:[%s2320_s3 + $0xd8] sm:$0xff] }
 0x493   :  { %1788 = vtanh.f32 %v603_v59 }
 0x494   :  { %v600_v60 = vpop.permute.xlu1 %599 }
 0x495   :  { %v604_v61 = vadd.f32 %v600_v60, %v2001_v23  ;;  %v654_v23 = vld [vmem:[%s2320_s3 + $0xc8] sm:$0xff] }
 0x497   :  { %1790 = vtanh.f32 %v604_v61 }
 0x49d   :  { %v1789_v62 = vpop.eup %1788 }
 0x49e   :  { %613 = vrot.lane.b32.xlu0 %v1789_v62, %s1868_s29 }
 0x4a1   :  { %v1791_v0 = vpop.eup %1790 }
 0x4a2   :  { %662 = vperm.xlu0 %1776, %v629_v63   ;;  %615 = vrot.lane.b32.xlu1 %v1791_v0, %s1868_s29 }
 0x4a6   :  { %671 = vperm.xlu0 %1776, %v632_v1   ;;  %665 = vperm.xlu1 %1777, %v630_v2  }
 0x4aa   :  { %677 = vperm.xlu0 %1776, %v634_v3   ;;  %668 = vperm.xlu1 %1777, %v631_v4  }
 0x4ae   :  { %683 = vperm.xlu0 %1776, %v636_v5   ;;  %674 = vperm.xlu1 %1777, %v633_v6  }
 0x4b2   :  { %689 = vperm.xlu0 %1776, %v638_v7   ;;  %680 = vperm.xlu1 %1777, %v635_v8  }
 0x4b6   :  { %695 = vperm.xlu0 %1776, %v640_v9   ;;  %686 = vperm.xlu1 %1777, %v637_v10  }
 0x4ba   :  { %701 = vperm.xlu0 %1776, %v642_v11   ;;  %692 = vperm.xlu1 %1777, %v639_v12  }
 0x4be   :  { %707 = vperm.xlu0 %1776, %v644_v13   ;;  %698 = vperm.xlu1 %1777, %v641_v14  }
 0x4c2   :  { %713 = vperm.xlu0 %1776, %v646_v15   ;;  %704 = vperm.xlu1 %1777, %v643_v16  }
 0x4c6   :  { %719 = vperm.xlu0 %1776, %v648_v17   ;;  %710 = vperm.xlu1 %1777, %v645_v18  }
 0x4ca   :  { %725 = vperm.xlu0 %1776, %v650_v19   ;;  %716 = vperm.xlu1 %1777, %v647_v20  }
 0x4ce   :  { %731 = vperm.xlu0 %1776, %v652_v21   ;;  %722 = vperm.xlu1 %1777, %v649_v22  }
 0x4d2   :  { %737 = vperm.xlu0 %1776, %v654_v23   ;;  %728 = vperm.xlu1 %1777, %v651_v24  }
 0x4d6   :  { %743 = vperm.xlu0 %1776, %v656_v25   ;;  %734 = vperm.xlu1 %1777, %v653_v26  }
 0x4da   :  { %749 = vperm.xlu0 %1776, %v658_v27   ;;  %740 = vperm.xlu1 %1777, %v655_v28  }
 0x4de   :  { %755 = vperm.xlu0 %1776, %v660_v29   ;;  %746 = vperm.xlu1 %1777, %v657_v30  }
 0x4e2   :  { %752 = vperm.xlu1 %1777, %v659_v31  }
 0x510   :  { %v614_v37 = vpop.permute.xlu0 %613 }
 0x511   :  { %v619_v39 = vmul.f32 %v614_v37, %v609_v34 }
 0x513   :  { %v621_v40 = vadd.f32 %v619_v39, %v607_v38 }
 0x514   :  { %v616_v42 = vpop.permute.xlu1 %615 }
 0x515   :  { %623 = vst.msk [vmem:[#allocation6] sm:$0xff] %vm432_vm3, %v621_v40  ;;  %v620_v44 = vmul.f32 %v616_v42, %v610_v41  ;;  %v625_v46 = vmax.f32 %v621_v40, 0.0 }
 0x517   :  { %v622_v45 = vadd.f32 %v620_v44, %v608_v43 }
 0x519   :  { %v626_v47 = vmax.f32 %v622_v45, 0.0  ;;  %624 = vst.msk [vmem:[#allocation6 + $0x8] sm:$0xff] %vm432_vm3, %v622_v45 }
 0x51b   :  { %v1724_v49 = vpack.c.bf16 %v626_v47, %v625_v46 }
 0x51d   :  { %1725 = vmatprep.subr.bf16.mxu1 %v1724_v49 }
 0x51e   :  { %1727 = vmatpush3.bf16.msra.mxu1 %v1724_v49 }
 0x521   :  { %v663_v36 = vpop.permute.xlu0 %662 }
 0x522   :  { %vm757_vm4 = vcmp.eq.s32.totalorder %v2152_v32, %v663_v36 }
 0x523   :  { %v1369_v33 = vsel %vm757_vm4, 1.0, %v1870_v50 }
 0x524   :  { %1601 = vmatprep.mubr.msk.f32.mxu1 %vm75_vm0, %v1369_v33 }
 0x525   :  { %v672_v35 = vpop.permute.xlu0 %671  ;;  %v666_v51 = vpop.permute.xlu1 %665 }
 0x526   :  { %vm758_vm5 = vcmp.eq.s32.totalorder %v2152_v32, %v666_v51  ;;  %vm760_vm6 = vcmp.eq.s32.totalorder %v2152_v32, %v672_v35  ;;  %v1871_v51 = vmov 0.0|0.0  }
 0x527   :  { %v1370_v52 = vsel %vm758_vm5, 1.0, %v1870_v50  ;;  %v1372_v56 = vsel %vm760_vm6, 1.0, %v1870_v50  ;;  %1728 = vmatprep.subr.bf16.mxu0 %v1871_v51 }
 0x528   :  { %1602 = vmatmul.mubr.msk.f32.vlgmr.msra.gmra.mrb[2].mxu1 %vm75_vm0, %v1370_v52  ;;  %v2255_v52 = vld [vmem:[%s2325_s8] sm:$0x1]  ;;  %s1874_s8 = smov [#allocation6]  }
 0x529   :  { %v678_v53 = vpop.permute.xlu0 %677  ;;  %v669_v54 = vpop.permute.xlu1 %668  ;;  %s1336_s19 = sshll.u32 %s1874_s8, 4  ;;  %s1337_s19 = int_to_ptr.vmem [resolvable:$true] %s1336_s19 }
 0x52a   :  { %vm759_vm7 = vcmp.eq.s32.totalorder %v2152_v32, %v669_v54  ;;  %vm762_vm8 = vcmp.eq.s32.totalorder %v2152_v32, %v678_v53  ;;  %s1814_s20 = scalar_lea.vmem %s1337_s19, 256  ;;  %p1819_p9 = scmp.lt.s32.totalorder %s1337_s19, %s1337_s19 }
 0x52b   :  { %v1371_v55 = vsel %vm759_vm7, 1.0, %v1870_v50  ;;  %v1374_v60 = vsel %vm762_vm8, 1.0, %v1870_v50  ;;  %p1815_p8 = scmp.ne.s32.totalorder %s1337_s19, %s1814_s20  ;;  %p1820_p10 = scmp.lt.s32.totalorder %s1814_s20, %s1814_s20 }
 0x52c   :  { %1604 = vmatprep.mubr.msk.f32.mxu1 %vm75_vm0, %v1371_v55 }
 0x52d   :  { %v684_v57 = vpop.permute.xlu0 %683  ;;  %v675_v58 = vpop.permute.xlu1 %674  ;;  %1605 = vmatmul.mubr.msk.f32.gmra.mrb[4].mxu1 %vm75_vm0, %v1372_v56  ;;  %p1821_p11 = por %p1820_p10, %p1819_p9 }
 0x52e   :  { %vm761_vm9 = vcmp.eq.s32.totalorder %v2152_v32, %v675_v58  ;;  %vm764_vm10 = vcmp.eq.s32.totalorder %v2152_v32, %v684_v57 }
 0x52f   :  { %v1373_v59 = vsel %vm761_vm9, 1.0, %v1870_v50  ;;  %v1376_v0 = vsel %vm764_vm10, 1.0, %v1870_v50  ;;  %p1822_p12 = pnand %p1821_p11, %p1815_p8 }
 0x530   :  { %1607 = vmatprep.mubr.msk.f32.mxu1 %vm75_vm0, %v1373_v59 }
 0x531   :  { %v690_v61 = vpop.permute.xlu0 %689  ;;  %v681_v62 = vpop.permute.xlu1 %680  ;;  %1608 = vmatmul.mubr.msk.f32.gmra.mrb[6].mxu1 %vm75_vm0, %v1374_v60 }
 0x532   :  { %vm763_vm11 = vcmp.eq.s32.totalorder %v2152_v32, %v681_v62  ;;  %vm766_vm12 = vcmp.eq.s32.totalorder %v2152_v32, %v690_v61 }
 0x533   :  { %v1375_v63 = vsel %vm763_vm11, 1.0, %v1870_v50  ;;  %v1378_v4 = vsel %vm766_vm12, 1.0, %v1870_v50 }
 0x534   :  { %1610 = vmatprep.mubr.msk.f32.mxu1 %vm75_vm0, %v1375_v63 }
 0x535   :  { %v696_v1 = vpop.permute.xlu0 %695  ;;  %v687_v2 = vpop.permute.xlu1 %686  ;;  %1611 = vmatmul.mubr.msk.f32.gmra.mrb[8].mxu1 %vm75_vm0, %v1376_v0 }
 0x536   :  { %vm765_vm13 = vcmp.eq.s32.totalorder %v2152_v32, %v687_v2  ;;  %vm768_vm14 = vcmp.eq.s32.totalorder %v2152_v32, %v696_v1 }
 0x537   :  { %v1377_v3 = vsel %vm765_vm13, 1.0, %v1870_v50  ;;  %v1380_v8 = vsel %vm768_vm14, 1.0, %v1870_v50 }
 0x538   :  { %1613 = vmatprep.mubr.msk.f32.mxu1 %vm75_vm0, %v1377_v3 }
 0x539   :  { %v702_v5 = vpop.permute.xlu0 %701  ;;  %v693_v6 = vpop.permute.xlu1 %692  ;;  %1614 = vmatmul.mubr.msk.f32.gmra.mrb[10].mxu1 %vm75_vm0, %v1378_v4 }
 0x53a   :  { %vm767_vm15 = vcmp.eq.s32.totalorder %v2152_v32, %v693_v6  ;;  %vm770_vm1 = vcmp.eq.s32.totalorder %v2152_v32, %v702_v5 }
 0x53b   :  { %v1379_v7 = vsel %vm767_vm15, 1.0, %v1870_v50  ;;  %v1382_v12 = vsel %vm770_vm1, 1.0, %v1870_v50 }
 0x53c   :  { %1616 = vmatprep.mubr.msk.f32.mxu1 %vm75_vm0, %v1379_v7 }
 0x53d   :  { %v708_v9 = vpop.permute.xlu0 %707  ;;  %v699_v10 = vpop.permute.xlu1 %698  ;;  %1617 = vmatmul.mubr.msk.f32.gmra.mrb[12].mxu1 %vm75_vm0, %v1380_v8 }
 0x53e   :  { %vm769_vm2 = vcmp.eq.s32.totalorder %v2152_v32, %v699_v10  ;;  %vm772_vm4 = vcmp.eq.s32.totalorder %v2152_v32, %v708_v9 }
 0x53f   :  { %v1381_v11 = vsel %vm769_vm2, 1.0, %v1870_v50  ;;  %v1384_v16 = vsel %vm772_vm4, 1.0, %v1870_v50 }
 0x540   :  { %1619 = vmatprep.mubr.msk.f32.mxu1 %vm75_vm0, %v1381_v11 }
 0x541   :  { %v714_v13 = vpop.permute.xlu0 %713  ;;  %v705_v14 = vpop.permute.xlu1 %704  ;;  %1620 = vmatmul.mubr.msk.f32.gmra.mrb[14].mxu1 %vm75_vm0, %v1382_v12 }
 0x542   :  { %vm771_vm5 = vcmp.eq.s32.totalorder %v2152_v32, %v705_v14  ;;  %vm774_vm6 = vcmp.eq.s32.totalorder %v2152_v32, %v714_v13 }
 0x543   :  { %v1383_v15 = vsel %vm771_vm5, 1.0, %v1870_v50  ;;  %v1386_v20 = vsel %vm774_vm6, 1.0, %v1870_v50 }
 0x544   :  { %1622 = vmatprep.mubr.msk.f32.mxu1 %vm75_vm0, %v1383_v15 }
 0x545   :  { %v720_v17 = vpop.permute.xlu0 %719  ;;  %v711_v18 = vpop.permute.xlu1 %710  ;;  %1623 = vmatmul.mubr.msk.f32.gmra.mrb[16].mxu1 %vm75_vm0, %v1384_v16 }
 0x546   :  { %vm773_vm7 = vcmp.eq.s32.totalorder %v2152_v32, %v711_v18  ;;  %vm776_vm8 = vcmp.eq.s32.totalorder %v2152_v32, %v720_v17 }
 0x547   :  { %v1385_v19 = vsel %vm773_vm7, 1.0, %v1870_v50  ;;  %v1388_v24 = vsel %vm776_vm8, 1.0, %v1870_v50  ;;  %vm1872_vm8 = vmmov 0  }
 0x548   :  { %1625 = vmatprep.mubr.msk.f32.mxu1 %vm75_vm0, %v1385_v19  ;;  %1681 = vmatprep.mubr.msk.f32.mxu0 %vm1872_vm8, %v1870_v50 }
 0x549   :  { %v726_v21 = vpop.permute.xlu0 %725  ;;  %v717_v22 = vpop.permute.xlu1 %716  ;;  %1626 = vmatmul.mubr.msk.f32.gmra.mrb[18].mxu1 %vm75_vm0, %v1386_v20 }
 0x54a   :  { %vm775_vm9 = vcmp.eq.s32.totalorder %v2152_v32, %v717_v22  ;;  %vm778_vm10 = vcmp.eq.s32.totalorder %v2152_v32, %v726_v21 }
 0x54b   :  { %v1387_v23 = vsel %vm775_vm9, 1.0, %v1870_v50  ;;  %v1390_v28 = vsel %vm778_vm10, 1.0, %v1870_v50 }
 0x54c   :  { %1628 = vmatprep.mubr.msk.f32.mxu1 %vm75_vm0, %v1387_v23 }
 0x54d   :  { %v732_v25 = vpop.permute.xlu0 %731  ;;  %v723_v26 = vpop.permute.xlu1 %722  ;;  %1629 = vmatmul.mubr.msk.f32.gmra.mrb[20].mxu1 %vm75_vm0, %v1388_v24 }
 0x54e   :  { %vm777_vm11 = vcmp.eq.s32.totalorder %v2152_v32, %v723_v26  ;;  %vm780_vm12 = vcmp.eq.s32.totalorder %v2152_v32, %v732_v25 }
 0x54f   :  { %v1389_v27 = vsel %vm777_vm11, 1.0, %v1870_v50  ;;  %v1392_v34 = vsel %vm780_vm12, 1.0, %v1870_v50 }
 0x550   :  { %1631 = vmatprep.mubr.msk.f32.mxu1 %vm75_vm0, %v1389_v27 }
 0x551   :  { %v738_v29 = vpop.permute.xlu0 %737  ;;  %v729_v30 = vpop.permute.xlu1 %728  ;;  %1632 = vmatmul.mubr.msk.f32.gmra.mrb[22].mxu1 %vm75_vm0, %v1390_v28 }
 0x552   :  { %vm779_vm13 = vcmp.eq.s32.totalorder %v2152_v32, %v729_v30  ;;  %vm782_vm14 = vcmp.eq.s32.totalorder %v2152_v32, %v738_v29 }
 0x553   :  { %v1391_v31 = vsel %vm779_vm13, 1.0, %v1870_v50  ;;  %v1394_v40 = vsel %vm782_vm14, 1.0, %v1870_v50 }
 0x554   :  { %1634 = vmatprep.mubr.msk.f32.mxu1 %vm75_vm0, %v1391_v31 }
 0x555   :  { %v744_v37 = vpop.permute.xlu0 %743  ;;  %v735_v38 = vpop.permute.xlu1 %734  ;;  %1635 = vmatmul.mubr.msk.f32.gmra.mrb[24].mxu1 %vm75_vm0, %v1392_v34 }
 0x556   :  { %vm781_vm15 = vcmp.eq.s32.totalorder %v2152_v32, %v735_v38  ;;  %vm784_vm1 = vcmp.eq.s32.totalorder %v2152_v32, %v744_v37 }
 0x557   :  { %v1393_v39 = vsel %vm781_vm15, 1.0, %v1870_v50  ;;  %v1396_v44 = vsel %vm784_vm1, 1.0, %v1870_v50 }
 0x558   :  { %1637 = vmatprep.mubr.msk.f32.mxu1 %vm75_vm0, %v1393_v39 }
 0x559   :  { %v750_v41 = vpop.permute.xlu0 %749  ;;  %v741_v42 = vpop.permute.xlu1 %740  ;;  %1638 = vmatmul.mubr.msk.f32.gmra.mrb[26].mxu1 %vm75_vm0, %v1394_v40 }
 0x55a   :  { %vm783_vm2 = vcmp.eq.s32.totalorder %v2152_v32, %v741_v42  ;;  %vm786_vm4 = vcmp.eq.s32.totalorder %v2152_v32, %v750_v41 }
 0x55b   :  { %v1395_v43 = vsel %vm783_vm2, 1.0, %v1870_v50  ;;  %v1398_v49 = vsel %vm786_vm4, 1.0, %v1870_v50 }
 0x55c   :  { %1640 = vmatprep.mubr.msk.f32.mxu1 %vm75_vm0, %v1395_v43 }
 0x55d   :  { %v747_v45 = vpop.permute.xlu1 %746  ;;  %1641 = vmatmul.mubr.msk.f32.gmra.mrb[28].mxu1 %vm75_vm0, %v1396_v44  ;;  %v756_v46 = vpop.permute.xlu0 %755 }
 0x55e   :  { %vm785_vm5 = vcmp.eq.s32.totalorder %v2152_v32, %v747_v45  ;;  %vm788_vm6 = vcmp.eq.s32.totalorder %v2152_v32, %v756_v46 }
 0x55f   :  { %v1397_v47 = vsel %vm785_vm5, 1.0, %v1870_v50  ;;  %v1400_v35 = vsel %vm788_vm6, 1.0, %v1870_v50 }
 0x560   :  { %1643 = vmatprep.mubr.msk.f32.mxu1 %vm75_vm0, %v1397_v47 }
 0x561   :  { %v753_v36 = vpop.permute.xlu1 %752  ;;  %1644 = vmatmul.mubr.msk.f32.gmra.mrb[30].mxu1 %vm75_vm0, %v1398_v49 }
 0x562   :  { %vm787_vm7 = vcmp.eq.s32.totalorder %v2152_v32, %v753_v36  ;;  %v1873_v32 = vmov 32  }
 0x563   :  { %v1399_v33 = vsel %vm787_vm7, 1.0, %v1870_v50  ;;  %1778 = vset.pattern.permute.xlu1 %v1873_v32  ;;  %1779 = vset.pattern.permute.xlu0 %v1873_v32 }
 0x564   :  { %1646 = vmatprep.mubr.msk.f32.mxu1 %vm75_vm0, %v1399_v33  ;;  %1193 = vperm.xlu1 %1778, %v2255_v52  }
 0x565   :  { %1647 = vmatmul.mubr.msk.f32.gmra.mrb[32].mxu1 %vm75_vm0, %v1400_v35  ;;  %vm2260_vm0 = vmpackc.low %vm432_vm3, %vm432_vm3 }
 0x5fb   :  { %v1603_v53 = vpop.f32.mrb[2].mxu1 }
 0x5fc   :  { %v1015_v54 = vpop.f32.mrb[3].mxu1 }
 0x600   :  { %v1606_v55 = vpop.f32.mrb[4].mxu1 }
 0x601   :  { %v1025_v56 = vpop.f32.mrb[5].mxu1 }
 0x604   :  { %v1609_v57 = vpop.f32.mrb[6].mxu1 }
 0x605   :  { %v1035_v58 = vpop.f32.mrb[7].mxu1 }
 0x608   :  { %v1612_v59 = vpop.f32.mrb[8].mxu1 }
 0x609   :  { %v1045_v60 = vpop.f32.mrb[9].mxu1 }
 0x60c   :  { %v1615_v61 = vpop.f32.mrb[10].mxu1 }
 0x60d   :  { %v1055_v50 = vpop.f32.mrb[11].mxu1 }
 0x610   :  { %v1618_v62 = vpop.f32.mrb[12].mxu1 }
 0x611   :  { %v1065_v63 = vpop.f32.mrb[13].mxu1 }
 0x614   :  { %v1621_v0 = vpop.f32.mrb[14].mxu1 }
 0x615   :  { %v1075_v1 = vpop.f32.mrb[15].mxu1 }
 0x618   :  { %v1624_v2 = vpop.f32.mrb[16].mxu1 }
 0x619   :  { %v1085_v3 = vpop.f32.mrb[17].mxu1 }
 0x61c   :  { %v1627_v4 = vpop.f32.mrb[18].mxu1 }
 0x61d   :  { %v1175_v5 = vmul.f32 %v1627_v4, %v1603_v53  ;;  %v1095_v6 = vpop.f32.mrb[19].mxu1 }
 0x61e   :  { %v1174_v7 = vmul.f32 %v1095_v6, %v1015_v54 }
 0x620   :  { %v1729_v9 = vpack.c.bf16 %v1175_v5, %v1174_v7  ;;  %v1630_v10 = vpop.f32.mrb[20].mxu1 }
 0x621   :  { %v1177_v11 = vmul.f32 %v1630_v10, %v1606_v55  ;;  %v1105_v12 = vpop.f32.mrb[21].mxu1 }
 0x622   :  { %v1176_v13 = vmul.f32 %v1105_v12, %v1025_v56  ;;  %1731 = vmatpush3.bf16.xpose.msk.msra.mxu0 %vm2260_vm0, %v1729_v9 }
 0x623   :  { %1732 = vmatprep.subr.bf16.mxu0 %v1871_v51 }
 0x624   :  { %v1733_v14 = vpack.c.bf16 %v1177_v11, %v1176_v13  ;;  %v1633_v15 = vpop.f32.mrb[22].mxu1 }
 0x625   :  { %v1179_v16 = vmul.f32 %v1633_v15, %v1609_v57  ;;  %v1115_v17 = vpop.f32.mrb[23].mxu1 }
 0x626   :  { %v1178_v18 = vmul.f32 %v1115_v17, %v1035_v58 }
 0x628   :  { %v1737_v19 = vpack.c.bf16 %v1179_v16, %v1178_v18  ;;  %v1636_v20 = vpop.f32.mrb[24].mxu1 }
 0x629   :  { %v1181_v21 = vmul.f32 %v1636_v20, %v1612_v59  ;;  %v1125_v22 = vpop.f32.mrb[25].mxu1 }
 0x62a   :  { %v1180_v23 = vmul.f32 %v1125_v22, %v1045_v60  ;;  %1735 = vmatpush3.bf16.xpose.msk.msra.mxu0 %vm2260_vm0, %v1733_v14 }
 0x62b   :  { %1736 = vmatprep.subr.bf16.mxu0 %v1871_v51 }
 0x62c   :  { %v1741_v24 = vpack.c.bf16 %v1181_v21, %v1180_v23  ;;  %v1639_v25 = vpop.f32.mrb[26].mxu1 }
 0x62d   :  { %v1183_v26 = vmul.f32 %v1639_v25, %v1615_v61  ;;  %v1135_v27 = vpop.f32.mrb[27].mxu1 }
 0x62e   :  { %v1182_v28 = vmul.f32 %v1135_v27, %v1055_v50 }
 0x630   :  { %v1745_v29 = vpack.c.bf16 %v1183_v26, %v1182_v28  ;;  %v1642_v30 = vpop.f32.mrb[28].mxu1 }
 0x631   :  { %v1185_v31 = vmul.f32 %v1642_v30, %v1618_v62  ;;  %v1145_v34 = vpop.f32.mrb[29].mxu1 }
 0x632   :  { %v1184_v37 = vmul.f32 %v1145_v34, %v1065_v63  ;;  %1739 = vmatpush3.bf16.xpose.msk.msra.mxu0 %vm2260_vm0, %v1737_v19 }
 0x633   :  { %1740 = vmatprep.subr.bf16.mxu0 %v1871_v51 }
 0x634   :  { %v1749_v38 = vpack.c.bf16 %v1185_v31, %v1184_v37  ;;  %v1645_v39 = vpop.f32.mrb[30].mxu1 }
 0x635   :  { %v1187_v40 = vmul.f32 %v1645_v39, %v1621_v0  ;;  %v1155_v41 = vpop.f32.mrb[31].mxu1 }
 0x636   :  { %v1186_v42 = vmul.f32 %v1155_v41, %v1075_v1 }
 0x638   :  { %v1753_v43 = vpack.c.bf16 %v1187_v40, %v1186_v42  ;;  %v1648_v44 = vpop.f32.mrb[32].mxu1 }
 0x639   :  { %v1189_v45 = vmul.f32 %v1648_v44, %v1624_v2  ;;  %v1165_v46 = vpop.f32.mrb[33].mxu1 }
 0x63a   :  { %v1188_v47 = vmul.f32 %v1165_v46, %v1085_v3  ;;  %1743 = vmatpush3.bf16.xpose.msk.msra.mxu0 %vm2260_vm0, %v1741_v24 }
 0x63b   :  { %1744 = vmatprep.subr.bf16.mxu0 %v1871_v51 }
 0x63c   :  { %v1757_v49 = vpack.c.bf16 %v1189_v45, %v1188_v47 }
 0x642   :  { %1747 = vmatpush3.bf16.xpose.msk.msra.mxu0 %vm2260_vm0, %v1745_v29 }
 0x643   :  { %1748 = vmatprep.subr.bf16.mxu0 %v1871_v51 }
 0x64a   :  { %1751 = vmatpush3.bf16.xpose.msk.msra.mxu0 %vm2260_vm0, %v1749_v38 }
 0x64b   :  { %1752 = vmatprep.subr.bf16.mxu0 %v1871_v51 }
 0x652   :  { %1755 = vmatpush3.bf16.xpose.msk.msra.mxu0 %vm2260_vm0, %v1753_v43 }
 0x653   :  { %1756 = vmatprep.subr.bf16.mxu0 %v1871_v51 }
 0x65a   :  { %1759 = vmatpush3.bf16.xpose.msk.msra.mxu0 %vm2260_vm0, %v1757_v49 }
 0x661   :  { %1682 = vmatmul.mubr.msk.f32.vlgmr.msra.gmra.mrb[6].mxu0 %vm432_vm3, %v2255_v52 }
 0x662   :  { %1825 = shalt.err (!%p1822_p12)
}
 0x663   :  { %s1826_s25 = scalar_lea.hbm %s2327_s10, 256 }
 0x664   :  { %p1827_p13 = scmp.ne.s32.totalorder %s2327_s10, %s1826_s25  ;;  %p1830_p0 = scmp.lt.u32.totalorder %s1826_s25, %s2327_s10 }
 0x666   :  { %p1832_p1 = pnand %p1830_p0, %p1827_p13 }
 0x668   :  { %1835 = shalt.err (!%p1832_p1)
}
 0x669   :  { %1342 = dma.vmem_to_hbm [thread:$0]  %s1337_s19, 256, %s2327_s10, [#allocation7], %s1865_s23, %s1865_s23, %s1866_s24   ;;  %v1197_v36 = vshrl.u32 %v627_v48, 7  ;;  %v1194_v35 = vpop.permute.xlu1 %1193 }
 0x66a   :  { %s1875_s5 = smov [#allocation5]  }
 0x66b   :  { %v1198_v33 = vsub.s32 0, %v1197_v36  ;;  %s1327_s30 = sshll.u32 %s1875_s5, 4  ;;  %s1328_s30 = int_to_ptr.vmem [resolvable:$true] %s1327_s30 }
 0x66c   :  { %s1836_s11 = scalar_lea.vmem %s1328_s30, 16  ;;  %s1840_s12 = scalar_lea.vmem %s1328_s30, 32 }
 0x66d   :  { %v1199_v51 = vrot.slane %v1194_v35, %v1198_v33  ;;  %p1837_p2 = scmp.ne.s32.totalorder %s1328_s30, %s1836_s11  ;;  %p1841_p3 = scmp.lt.s32.totalorder %s1328_s30, %s1328_s30 }
 0x66e   :  { %p1842_p4 = scmp.lt.s32.totalorder %s1840_s12, %s1836_s11 }
 0x670   :  { %p1843_p5 = por %p1842_p4, %p1841_p3 }
 0x672   :  { %p1844_p6 = pnand %p1843_p5, %p1837_p2 }
 0x734   :  { %v1316_v52 = vpop.f32.mrb[6].mxu0 }
 0x735   :  { %v1317_v32 = vadd.f32 %v1316_v52, %v1199_v51  ;;  %v1683_v53 = vpop.f32.mrb[7].mxu0 }
 0x737   :  { %1320 = vst [vmem:[#allocation5] sm:$0x1] %v1317_v32 }
 0x738   :  { %1847 = shalt.err (!%p1844_p6)
}
 0x739   :  { %s1848_s24 = scalar_lea.hbm %s2326_s9, 16 }
 0x73a   :  { %p1849_p7 = scmp.ne.s32.totalorder %s2326_s9, %s1848_s24  ;;  %p1852_p8 = scmp.lt.u32.totalorder %s1848_s24, %s2326_s9 }
 0x73c   :  { %p1854_p9 = pnand %p1852_p8, %p1849_p7 }
 0x73e   :  { %1857 = shalt.err (!%p1854_p9)
}
 0x73f   :  { %1330 = dma.vmem_to_hbm [thread:$0]  %s1328_s30, 16, %s2326_s9, [#allocation4]  }
 0x740   :  { %1860 = dma.done.wait [#allocation4], 16  }
 0x741   :  { %1861 = vsyncadd [#allocation4], 4294967280 }
 0x742   :  { %1862 = dma.done.wait [#allocation7], 256  }
 0x743   :  { %1863 = vsyncadd [#allocation7], 4294967040 }
 0x744   :  { %1349 = vsyncpa [#allocation3], 1 }
 0x745   :  { %1350 = vsyncpa [#allocation4], 1 }
 0x746   :  { %1351 = vsyncpa [#allocation7], 1 }

</bundles_post_ra>
